<compile_context>
chip_gen: v6e
topology: v6e:2x2x1
jax: 0.10.0
libtpu: 0.0.40
codegen_flags: <defaults>
</compile_context>

<pallas_src>
import jax
import jax.numpy as jnp
from jax.experimental import pallas as pl
from jax.experimental.pallas import tpu as pltpu

PAD = int(224 / 21)  # = 10, hard-coded exactly as in the PyTorch module


def _random_shift_kernel(shift_ref, sel_ref, x_ref, o_ref):
    """One batch tile (B_TILE images) per grid step.

    shift_ref: SMEM int32 (n, 2); [:, 0] = x-shift (columns), [:, 1] = y-shift
               (rows), both in [0, 2*pad] (matches torch shift[...,0]/[...,1]).
    sel_ref:   VMEM (2*pad+1, w, w); sel_ref[s, q, j] = 1 iff
               q == clip(j + s - pad, 0, w-1). Resident (constant index_map).
    x_ref:     VMEM (B_TILE, c, h + 2*pad, w), H replicate-padded in the wrapper.
    o_ref:     VMEM (B_TILE, c, h, w).
    """
    b_tile, c, h, w = o_ref.shape
    step = pl.program_id(0)

    def body(i, carry):
        b = step * b_tile + i
        sx = shift_ref[b, 0]          # column shift in [0, 2*pad]
        sy = shift_ref[b, 1]          # row shift in [0, 2*pad]

        # Row selection: dynamic sublane slice of the H-padded image (free).
        rows = x_ref[i, :, pl.ds(sy, h), :]               # (c, h, w)

        # Column selection: one rank-2 dot against the precomputed one-hot
        # matrix for this image's shift. One-hot selection is exact at HIGHEST.
        sel = sel_ref[sx]                                  # (w, w)
        flat = rows.reshape(c * h, w)
        shifted = jnp.dot(flat, sel,
                          preferred_element_type=jnp.float32,
                          precision=jax.lax.Precision.HIGHEST)
        o_ref[i] = shifted.reshape(c, h, w).astype(o_ref.dtype)
        return carry

    jax.lax.fori_loop(0, b_tile, body, 0, unroll=True)


def _pick_batch_tile(n, c, h, w, pad, target=8, vmem_budget_bytes=24 << 20):
    """Largest divisor of n that is <= target and fits the VMEM budget
    (double-buffered in+out blocks plus the resident selection table),
    preferring a grid extent >= 2 so the batch axis can split across the two
    TensorCores on v7x (no effect on v5e/v6e)."""
    hp = h + 2 * pad
    bytes_per_image = 4 * c * (hp * w + h * w)        # f32 in + out
    table_bytes = 4 * (2 * pad + 1) * w * w
    fitting = [d for d in range(1, n + 1)
               if n % d == 0 and d <= target
               and 2 * d * bytes_per_image + 2 * table_bytes <= vmem_budget_bytes]
    if not fitting:
        return 1
    multi_step = [d for d in fitting if n // d >= 2]
    return max(multi_step) if multi_step else max(fitting)


def random_shifts_aug(x, key, pad=PAD):
    """JAX/Pallas equivalent of RandomShiftsAug.forward.

    x: (n, c, h, w), h == w.  Returns (out, shifts) where shifts is the
    per-image integer shift (n, 2) int32 used (for reference checking).
    """
    if not pad:
        return x, None
    n, c, h, w = x.shape
    assert h == w

    # torch.randint(0, 2*pad+1, (n, 1, 1, 2)); col 0 = x-shift, col 1 = y-shift.
    # TODO(synk): RNG stream differs from torch.randint; distribution & semantics match.
    shifts = jax.random.randint(key, (n, 2), 0, 2 * pad + 1, dtype=jnp.int32)

    # Replicate-pad H only; rows are then selected inside the kernel with a
    # dynamic sublane slice (no row matmul and no extra W columns in the DMA).
    xp = jnp.pad(x, ((0, 0), (0, 0), (pad, pad), (0, 0)), mode='edge')
    hp = h + 2 * pad

    # Hoisted column one-hot table for every possible shift:
    #   sel_table[s, q, j] = 1 iff q == clip(j + s - pad, 0, w-1)
    s_ids = jnp.arange(2 * pad + 1, dtype=jnp.int32)[:, None, None]
    q_ids = jnp.arange(w, dtype=jnp.int32)[None, :, None]
    j_ids = jnp.arange(w, dtype=jnp.int32)[None, None, :]
    sel_table = (q_ids == jnp.clip(j_ids + s_ids - pad, 0, w - 1)).astype(x.dtype)

    b_tile = _pick_batch_tile(n, c, h, w, pad)

    out = pl.pallas_call(
        _random_shift_kernel,
        out_shape=jax.ShapeDtypeStruct((n, c, h, w), x.dtype),
        grid_spec=pltpu.PrefetchScalarGridSpec(
            num_scalar_prefetch=1,
            grid=(n // b_tile,),
            in_specs=[
                # Selection table: constant block index => fetched once, resident.
                pl.BlockSpec((2 * pad + 1, w, w), lambda s, shift: (0, 0, 0)),
                pl.BlockSpec((b_tile, c, hp, w), lambda s, shift: (s, 0, 0, 0)),
            ],
            out_specs=pl.BlockSpec((b_tile, c, h, w), lambda s, shift: (s, 0, 0, 0)),
        ),
        compiler_params=pltpu.CompilerParams(
            dimension_semantics=("parallel",),
            vmem_limit_bytes=32 * 1024 * 1024,
        ),
    )(shifts, sel_table, xp)
    return out, shifts


def _reference(x, shifts, pad=PAD):
    """Pure-JAX reference: replicate-pad + integer crop (exact module semantics)."""
    n, c, h, w = x.shape
    sx = shifts[:, 0][:, None, None, None]
    sy = shifts[:, 1][:, None, None, None]
    ii = jnp.arange(h)[None, None, :, None]
    jj = jnp.arange(w)[None, None, None, :]
    ri = jnp.clip(ii + sy - pad, 0, h - 1)
    ci = jnp.clip(jj + sx - pad, 0, w - 1)
    ni = jnp.arange(n)[:, None, None, None]
    cc = jnp.arange(c)[None, :, None, None]
    return x[ni, cc, ri, ci]


if __name__ == "__main__":
    key = jax.random.PRNGKey(0)
    kx, ks = jax.random.split(key)

    n, c, h, w = 4, 4, 16, 16
    x = jax.random.normal(kx, (n, c, h, w), dtype=jnp.float32)

    out, shifts = random_shifts_aug(x, ks)
    out = jax.block_until_ready(out)

    ref = _reference(x, shifts)
    assert out.shape == (n, c, h, w) and out.dtype == jnp.float32
    assert jnp.allclose(out, ref, atol=1e-5), "Pallas output does not match reference"

    print("KERNEL_OK")
</pallas_src>

<mosaic_0001>
module attributes {stable_mosaic.version = 11 : i64} {
  func.func @_random_shift_kernel(%arg0: i32, %arg1: memref<4x2xi32, #tpu.memory_space<smem>>, %arg2: memref<21x16x16xf32, #tpu.memory_space<vmem>>, %arg3: memref<2x4x36x16xf32, #tpu.memory_space<vmem>>, %arg4: memref<2x4x16x16xf32, #tpu.memory_space<vmem>>) attributes {dimension_semantics = [#tpu.dimension_semantics<parallel>], iteration_bounds = array<i64: 2>, scalar_prefetch = 1 : i64, scratch_operands = 0 : i64, tpu.core_type = #tpu.core_type<tc>, window_params = [{pipeline_mode = #tpu.pipeline_mode<synchronous>, transform_indices = @transform_0, window_bounds = array<i64: 21, 16, 16>}, {transform_indices = @transform_1, window_bounds = array<i64: 2, 4, 36, 16>}, {transform_indices = @transform_2, window_bounds = array<i64: 2, 4, 16, 16>}]} {
    %c0_i32 = arith.constant 0 : i32
    %c2_i32 = arith.constant 2 : i32
    %0 = arith.muli %arg0, %c2_i32 : i32
    %1 = arith.addi %0, %c0_i32 : i32
    %2 = arith.index_cast %1 : i32 to index
    %c0 = arith.constant 0 : index
    %3 = memref.load %arg1[%2, %c0] : memref<4x2xi32, #tpu.memory_space<smem>>
    %4 = arith.index_cast %1 : i32 to index
    %c1 = arith.constant 1 : index
    %5 = memref.load %arg1[%4, %c1] : memref<4x2xi32, #tpu.memory_space<smem>>
    %6 = arith.index_cast %c0_i32 : i32 to index
    %c0_0 = arith.constant 0 : index
    %7 = arith.index_cast %5 : i32 to index
    %c0_1 = arith.constant 0 : index
    %8 = vector.load %arg3[%6, %c0_0, %7, %c0_1] : memref<2x4x36x16xf32, #tpu.memory_space<vmem>>, vector<1x4x16x16xf32>
    %9 = vector.shape_cast %8 : vector<1x4x16x16xf32> to vector<4x16x16xf32>
    %10 = arith.index_cast %3 : i32 to index
    %c0_2 = arith.constant 0 : index
    %c0_3 = arith.constant 0 : index
    %11 = vector.load %arg2[%10, %c0_2, %c0_3] : memref<21x16x16xf32, #tpu.memory_space<vmem>>, vector<1x16x16xf32>
    %12 = vector.shape_cast %11 : vector<1x16x16xf32> to vector<16x16xf32>
    %13 = vector.shape_cast %9 : vector<4x16x16xf32> to vector<64x16xf32>
    %cst = arith.constant dense<0.000000e+00> : vector<64x16xf32>
    %14 = tpu.matmul %13, %12, %cst {dimension_numbers = #tpu.dot_dimension_numbers<[1], [0], [0], [1], [0, 0, 1, 1], [], []>, precision = #tpu.contract_precision<fp32>} : vector<64x16xf32>, vector<16x16xf32>, vector<64x16xf32> -> vector<64x16xf32>
    %15 = vector.shape_cast %14 : vector<64x16xf32> to vector<4x16x16xf32>
    %16 = arith.index_cast %c0_i32 : i32 to index
    %c0_4 = arith.constant 0 : index
    %c0_5 = arith.constant 0 : index
    %c0_6 = arith.constant 0 : index
    %17 = vector.load %arg4[%16, %c0_4, %c0_5, %c0_6] : memref<2x4x16x16xf32, #tpu.memory_space<vmem>>, vector<1x4x16x16xf32>
    %18 = vector.shape_cast %17 : vector<1x4x16x16xf32> to vector<4x16x16xf32>
    %19 = vector.shape_cast %15 : vector<4x16x16xf32> to vector<1x4x16x16xf32>
    tpu.vector_store %arg4[%16, %c0_4, %c0_5, %c0_6], %19 {strides = array<i32>} : memref<2x4x16x16xf32, #tpu.memory_space<vmem>>, vector<1x4x16x16xf32>,
    %c1_i32 = arith.constant 1 : i32
    %c2_i32_7 = arith.constant 2 : i32
    %20 = arith.muli %arg0, %c2_i32_7 : i32
    %21 = arith.addi %20, %c1_i32 : i32
    %22 = arith.index_cast %21 : i32 to index
    %c0_8 = arith.constant 0 : index
    %23 = memref.load %arg1[%22, %c0_8] : memref<4x2xi32, #tpu.memory_space<smem>>
    %24 = arith.index_cast %21 : i32 to index
    %c1_9 = arith.constant 1 : index
    %25 = memref.load %arg1[%24, %c1_9] : memref<4x2xi32, #tpu.memory_space<smem>>
    %26 = arith.index_cast %c1_i32 : i32 to index
    %c0_10 = arith.constant 0 : index
    %27 = arith.index_cast %25 : i32 to index
    %c0_11 = arith.constant 0 : index
    %28 = vector.load %arg3[%26, %c0_10, %27, %c0_11] : memref<2x4x36x16xf32, #tpu.memory_space<vmem>>, vector<1x4x16x16xf32>
    %29 = vector.shape_cast %28 : vector<1x4x16x16xf32> to vector<4x16x16xf32>
    %30 = arith.index_cast %23 : i32 to index
    %c0_12 = arith.constant 0 : index
    %c0_13 = arith.constant 0 : index
    %31 = vector.load %arg2[%30, %c0_12, %c0_13] : memref<21x16x16xf32, #tpu.memory_space<vmem>>, vector<1x16x16xf32>
    %32 = vector.shape_cast %31 : vector<1x16x16xf32> to vector<16x16xf32>
    %33 = vector.shape_cast %29 : vector<4x16x16xf32> to vector<64x16xf32>
    %cst_14 = arith.constant dense<0.000000e+00> : vector<64x16xf32>
    %34 = tpu.matmul %33, %32, %cst_14 {dimension_numbers = #tpu.dot_dimension_numbers<[1], [0], [0], [1], [0, 0, 1, 1], [], []>, precision = #tpu.contract_precision<fp32>} : vector<64x16xf32>, vector<16x16xf32>, vector<64x16xf32> -> vector<64x16xf32>
    %35 = vector.shape_cast %34 : vector<64x16xf32> to vector<4x16x16xf32>
    %36 = arith.index_cast %c1_i32 : i32 to index
    %c0_15 = arith.constant 0 : index
    %c0_16 = arith.constant 0 : index
    %c0_17 = arith.constant 0 : index
    %37 = vector.load %arg4[%36, %c0_15, %c0_16, %c0_17] : memref<2x4x16x16xf32, #tpu.memory_space<vmem>>, vector<1x4x16x16xf32>
    %38 = vector.shape_cast %37 : vector<1x4x16x16xf32> to vector<4x16x16xf32>
    %39 = vector.shape_cast %35 : vector<4x16x16xf32> to vector<1x4x16x16xf32>
    tpu.vector_store %arg4[%36, %c0_15, %c0_16, %c0_17], %39 {strides = array<i32>} : memref<2x4x16x16xf32, #tpu.memory_space<vmem>>, vector<1x4x16x16xf32>,
    %c2_i32_18 = arith.constant 2 : i32
    return
  }
  func.func @transform_0(%arg0: i32, %arg1: memref<4x2xi32, #tpu.memory_space<smem>>) -> (i32, i32, i32) {
    %c0_i32 = arith.constant 0 : i32
    %c0_i32_0 = arith.constant 0 : i32
    %c0_i32_1 = arith.constant 0 : i32
    %c0_i32_2 = arith.constant 0 : i32
    return %c0_i32, %c0_i32_0, %c0_i32_1 : i32, i32, i32
  }
  func.func @transform_1(%arg0: i32, %arg1: memref<4x2xi32, #tpu.memory_space<smem>>) -> (i32, i32, i32, i32) {
    %c0_i32 = arith.constant 0 : i32
    %c0_i32_0 = arith.constant 0 : i32
    %c0_i32_1 = arith.constant 0 : i32
    %c0_i32_2 = arith.constant 0 : i32
    return %arg0, %c0_i32, %c0_i32_0, %c0_i32_1 : i32, i32, i32, i32
  }
  func.func @transform_2(%arg0: i32, %arg1: memref<4x2xi32, #tpu.memory_space<smem>>) -> (i32, i32, i32, i32) {
    %c0_i32 = arith.constant 0 : i32
    %c0_i32_0 = arith.constant 0 : i32
    %c0_i32_1 = arith.constant 0 : i32
    %c0_i32_2 = arith.constant 0 : i32
    return %arg0, %c0_i32, %c0_i32_0, %c0_i32_1 : i32, i32, i32, i32
  }
}

</mosaic_0001>

<bundles_post_ra>
// kernel: tpu_custom_call.1
= control target key start
LH: loop header
LB: loop body
LE: loop exit
PB: predicated region body
PF: predicated region fallthrough
CT: control target
= control target key end

     0   :  { %s2849_s0 = inlined_call_operand.vmem [shape: s32[4,2], index: 0, kind: input, shape index: {}]   ;;  %s2850_s1 = inlined_call_operand.vmem [shape: f32[21,16,16], index: 1, kind: input, shape index: {}]   ;;  %s2851_s2 = inlined_call_operand.vmem [shape: f32[4,4,36,16], index: 2, kind: input, shape index: {}]   ;;  %s2852_s3 = inlined_call_operand.hbm [shape: f32[4,4,16,16], index: 3, kind: output, shape index: {}]  }
   0x1   :  { %s8_s14 = sshll.u32 %s2849_s0, 4  ;;  %s9_s14 = int_to_ptr.vmem [resolvable:$true] %s8_s14 }
   0x2   :  { %s2257_s15 = scalar_lea.vmem %s9_s14, 64  ;;  %p2262_p1 = scmp.lt.s32.totalorder %s9_s14, %s9_s14 }
   0x3   :  { %p2258_p0 = scmp.ne.s32.totalorder %s9_s14, %s2257_s15  ;;  %p2263_p2 = scmp.lt.s32.totalorder %s2257_s15, %s2257_s15 }
   0x5   :  { %p2264_p3 = por %p2263_p2, %p2262_p1 }
   0x7   :  { %p2265_p4 = pnand %p2264_p3, %p2258_p0 }
   0x9   :  { %2268 = shalt.err (!%p2265_p4)  }
   0xa   :  { %s2333_s16 = smov [#allocation3]  }
   0xb   :  { %11 = dma.vmem_to_smem %s9_s14, 64, %s2333_s16, [#allocation2] }
   0xc   :  { %2311 = dma.done.wait [#allocation2], 64 }
   0xd   :  { %2312 = vsyncadd [#allocation2], 4294967232 }
   0xe   :  { %13 = sfence }
   0xf   :  { %14 = vsyncpa [#allocation5], 0 }
  0x10   :  { %16 = vsyncpa [#allocation5 + $0x1], 0  ;;  %s2360_s17 = smov 0   ;;  %s2362_s18 = smov 0  }
  0x11   :  { %s2364_s0 = smov 0   ;;  %s2366_s19 = smov 0  }
  0x12 LB: > { %s2381_s20 = sadd.s32 4294967295, %s2331_s19   ;;  %s1862_s21 = sadd.s32 4294967294, %s2331_s19   ;;  %s2331_s19 = sphi %s2366_s19, %s2858_s19   ;;  %s2327_s0 = sphi %s2364_s0, %s2857_s0   ;;  %s2323_s18 = sphi %s2362_s18, %s2856_s18   ;;  %s2319_s17 = sphi %s2360_s17, %s2855_s17  }
  0x13   : > { %s2385_s22 = sadd.s32 1, %s2331_s19   ;;  %s76_s23 = sadd.s32 1, %s2327_s0 }
  0x14   : > { %s73_s24 = ssub.s32 %s2331_s19, %s2385_s22  ;;  %p86_p5 = scmp.ne.s32.totalorder %s2327_s0, %s2323_s18 }
  0x15   : > { %p74_p6 = scmp.eq.s32.totalorder %s73_s24, 0  ;;  %p87_p7 = scmp.eq.s32.totalorder %s2381_s20, 1 }
  0x16   : > { %p92_p8 = scmp.ne.s32.totalorder %s2323_s18, %s2319_s17  ;;  %p93_p9 = scmp.eq.s32.totalorder %s1862_s21, 1 }
  0x17   : > { %s2396_s25 = scalar_select %p74_p6, %s2327_s0, %s76_s23  }
  0x18   : > { %p2398_p10 = por %p87_p7, %p86_p5  ;;  %p2402_p11 = por %p93_p9, %p92_p8 }
  0x19   : > { %p1865_p12 = scmp.ge.s32.totalorder %s2331_s19, 1  ;;  %p124_p13 = scmp.lt.s32.totalorder %s2331_s19, 3 }
  0x1b   : > { %p125_p0 = pnand %p1865_p12, %p124_p13 }
  0x1c   : > { %s2409_s28 = sshll.u32 (!%p125_p0), %s2381_s20, 8  ;;  %s1867_s29 = sshll.u32 (!%p125_p0), %s2381_s20, 1 }
  0x1d   : > { %128 = sbr.rel (%p125_p0) target bundleno = 357 (0x165), region = 28  ;;  %s157_s30 = sld [smem:[#allocation3 + %s2409_s28]] (!%p125_p0) }
  0x1e   : > { %p148_p1 = scmp.lt.s32.totalorder (!%p125_p0), %s1867_s29, 3  ;;  %s158_s4 = sadd.s32 (!%p125_p0), 1, %s2409_s28 }
  0x1f   : > { %s159_s5 = sld [smem:[#allocation3 + %s158_s4]] (!%p125_p0)  ;;  %s1898_s7 = sadd.s32 (!%p125_p0), 128, %s2409_s28 }
  0x20   : > { %s2432_s16 = sld [smem:[#allocation3 + %s1898_s7]] (!%p125_p0) }
  0x22   : > { %s2860_s29 = smov (!%p148_p1, %s1867_s29), 3  ;;  %vm173_vm0 = vcmask 130048  }
  0x23   : > { %s2214_s6 = smul.u32 160, %s2860_s29  ;;  %s1871_s8 = sshll.u32 %s157_s30, 4 }
  0x24   : > { %s170_s14 = scalar_lea.vmem %s2850_s1, %s1871_s8  ;;  %s969_s30 = sadd.s32 1, %s1898_s7 }
  0x25   : > { %s2418_s11 = scalar_lea.vmem %s2851_s2, %s2214_s6  ;;  %v172_v0 = vld [vmem:[%s170_s14 + $0x8] sm:$0xff]  ;;  %v171_v1 = vld [vmem:[%s170_s14] sm:$0xff]  ;;  %s970_s28 = sld [smem:[#allocation3 + %s969_s30]] }
  0x26   : > { %v2423_v2 = vand.u32 4294901760, %v172_v0  ;;  %v2425_v3 = vand.u32 4294901760, %v171_v1  ;;  %s2428_s15 = scalar_lea.vmem %s2418_s11, %s159_s5  ;;  %s1881_s21 = sshll.u32 %s2432_s16, 4 }
  0x27   : > { %v161_v4 = vld [vmem:[%s2428_s15] sm:$0xff]  ;;  %v162_v5 = vld [vmem:[%s2428_s15 + $0x8] sm:$0xff]  ;;  %v164_v11 = vld [vmem:[%s2428_s15 + $0x30] sm:$0xff]  ;;  %s2524_s29 = scalar_lea.vmem %s2850_s1, %s1881_s21  ;;  %s144_s5 = sand.u32 1, %s2323_s18  }
  0x28   : > { %v163_v6 = vld [vmem:[%s2428_s15 + $0x28] sm:$0xff]  ;;  %2022 = vmatprep.subr.mxu0 %v2423_v2  ;;  %v2439_v7 = vsub.f32 %v172_v0, %v2423_v2  ;;  %v175_v8 = vsel %vm173_vm0, %v161_v4, 0  ;;  %v178_v9 = vsel %vm173_vm0, %v162_v5, 0  ;;  %v2444_v10 = vsub.f32 %v171_v1, %v2425_v3  ;;  %v165_v12 = vld [vmem:[%s2428_s15 + $0x50] sm:$0xff]  ;;  %v166_v13 = vld [vmem:[%s2428_s15 + $0x58] sm:$0xff]  ;;  %s1866_s6 = sshll.u32 %s144_s5, 7 }
  0x29   : > { %2023 = vmatpush3.msra.mxu0 %v2423_v2  ;;  %v2450_v14 = vand.u32 4294901760, %v175_v8  ;;  %v2452_v15 = vand.u32 4294901760, %v178_v9  ;;  %v181_v16 = vsel %vm173_vm0, %v163_v6, 0  ;;  %v184_v17 = vsel %vm173_vm0, %v164_v11, 0  ;;  %v167_v34 = vld [vmem:[%s2428_s15 + $0x78] sm:$0xff]  ;;  %v168_v35 = vld [vmem:[%s2428_s15 + $0x80] sm:$0xff] }
  0x2a   : > { %2024 = vmatprep.subr.mxu0 %v2425_v3  ;;  %v2458_v18 = vand.u32 4294901760, %v2439_v7  ;;  %v2461_v19 = vand.u32 4294901760, %v2444_v10  ;;  %v2463_v20 = vand.u32 4294901760, %v181_v16  ;;  %v2465_v21 = vand.u32 4294901760, %v184_v17  ;;  %v984_v60 = vld [vmem:[%s2524_s29 + $0x8] sm:$0xff]  ;;  %s2764_s7 = scalar_lea.vmem [#allocation4], %s1866_s6 }
  0x2b   : > { %2025 = vmatpush3.msra.mxu0 %v2425_v3  ;;  %v2469_v22 = vsub.f32 %v175_v8, %v2450_v14  ;;  %v2472_v23 = vsub.f32 %v178_v9, %v2452_v15  ;;  %2042 = vmatprep.mubr.f32.mxu1 %v2450_v14  ;;  %v187_v24 = vsel %vm173_vm0, %v165_v12, 0  ;;  %v190_v25 = vsel %vm173_vm0, %v166_v13, 0  ;;  %s2580_s4 = scalar_lea.vmem %s2418_s11, %s970_s28  ;;  %s1900_s8 = sshll.u32 %s2381_s20, 11 }
  0x2c   : > { %v377_v26 = vsub.f32 %v2439_v7, %v2458_v18  ;;  %v384_v27 = vsub.f32 %v2444_v10, %v2461_v19  ;;  %2054 = vmatprep.subr.mxu0 %v2439_v7  ;;  %v2483_v28 = vsub.f32 %v181_v16, %v2463_v20  ;;  %v2486_v29 = vsub.f32 %v184_v17, %v2465_v21  ;;  %v1873_v13 = vld [vmem:[%s2580_s4 + $0xa0] sm:$0xff]  ;;  %s1793_s9 = sshll.u32 %s2764_s7, 4  ;;  %s2799_s12 = scalar_lea.hbm %s2852_s3, %s1900_s8  ;;  %s2801_s9 = int_to_ptr.vmem [resolvable:$true] %s1793_s9 }
  0x2d   : > { %v267_v30 = vand.u32 4294901760, %v2469_v22  ;;  %v277_v31 = vand.u32 4294901760, %v2472_v23  ;;  %v2490_v32 = vand.u32 4294901760, %v187_v24  ;;  %v2492_v33 = vand.u32 4294901760, %v190_v25  ;;  %s2809_s20 = scalar_lea.sflag [#allocation5], %s144_s5  ;;  %s2269_s13 = scalar_lea.vmem %s2801_s9, 2048 }
  0x2e   : > { %v378_v36 = vand.u32 4294901760, %v377_v26  ;;  %v385_v37 = vand.u32 4294901760, %v384_v27  ;;  %v287_v38 = vand.u32 4294901760, %v2483_v28  ;;  %v297_v39 = vand.u32 4294901760, %v2486_v29  ;;  %v1877_v27 = vld [vmem:[%s2580_s4 + $0xf0] sm:$0xff]  ;;  %p2270_p2 = scmp.ne.s32.totalorder %s2801_s9, %s2269_s13  ;;  %s2334_s14 = smov [#allocation4]  }
  0x2f   : > { %v268_v40 = vsub.f32 %v2469_v22, %v267_v30  ;;  %v278_v41 = vsub.f32 %v2472_v23, %v277_v31  ;;  %v2506_v42 = vsub.f32 %v187_v24, %v2490_v32  ;;  %v2509_v43 = vsub.f32 %v190_v25, %v2492_v33  ;;  %v1876_v25 = vld [vmem:[%s2580_s4 + $0xd0] sm:$0xff]  ;;  %s2273_s15 = sshll.u32 %s2334_s14, 4  ;;  %s2274_s15 = int_to_ptr.vmem [resolvable:$false] %s2273_s15 }
  0x30   : > { %2038 = vmatprep.subr.mxu1 %v378_v36  ;;  %v288_v44 = vsub.f32 %v2483_v28, %v287_v38  ;;  %v298_v45 = vsub.f32 %v2486_v29, %v297_v39  ;;  %v193_v46 = vsel %vm173_vm0, %v167_v34, 0  ;;  %v196_v47 = vsel %vm173_vm0, %v168_v35, 0  ;;  %v1878_v35 = vld [vmem:[%s2580_s4 + $0xf8] sm:$0xff]  ;;  %p2271_p3 = pnand %p2270_p2, %p2398_p10  ;;  %s2275_s16 = scalar_lea.vmem %s2274_s15, 4096 }
  0x31   : > { %v269_v48 = vand.u32 4294901760, %v268_v40  ;;  %2039 = vmatpush3.msra.mxu1 %v378_v36  ;;  %v279_v49 = vand.u32 4294901760, %v278_v41  ;;  %v307_v50 = vand.u32 4294901760, %v2506_v42  ;;  %v317_v51 = vand.u32 4294901760, %v2509_v43  ;;  %p2276_p5 = scmp.lt.s32.totalorder %s2801_s9, %s2274_s15  ;;  %p2277_p6 = scmp.lt.s32.totalorder %s2275_s16, %s2269_s13 }
  0x32   : > { %2040 = vmatprep.subr.mxu1 %v385_v37  ;;  %v289_v52 = vand.u32 4294901760, %v288_v44  ;;  %v2526_v53 = vand.u32 4294901760, %v193_v46  ;;  %v2528_v54 = vand.u32 4294901760, %v196_v47  ;;  %v299_v56 = vand.u32 4294901760, %v298_v45  ;;  %p2272_p4 = pneg %p2271_p3 }
  0x33   : > { %2026 = vmatprep.mubr.f32.mxu0 %v269_v48  ;;  %2041 = vmatpush3.msra.mxu1 %v385_v37  ;;  %v308_v55 = vsub.f32 %v2506_v42, %v307_v50  ;;  %v318_v57 = vsub.f32 %v2509_v43, %v317_v51  ;;  %v2551_v0 = vand.u32 4294901760, %v984_v60  ;;  %v998_v34 = vsel %vm173_vm0, %v1877_v27, 0  ;;  %v1879_v37 = vld [vmem:[%s2580_s4 + $0x118] sm:$0xff]  ;;  %p2278_p7 = por %p2277_p6, %p2276_p5 }
  0x34   : > { %2027 = vmatmul.mubr.f32.vlgmr.msra.gmra.mxu0 %v279_v49  ;;  %2043 = vmatmul.mubr.f32.vlgmr.msra.gmra.mxu1 %v2452_v15  ;;  %v2538_v58 = vsub.f32 %v193_v46, %v2526_v53  ;;  %v2541_v59 = vsub.f32 %v196_v47, %v2528_v54  ;;  %v2656_v41 = vand.u32 4294901760, %v998_v34 }
  0x35   : > { %2055 = vmatpush3.msra.mxu0 %v2439_v7  ;;  %2070 = vmatprep.subr.mxu1 %v2423_v2  ;;  %v309_v61 = vand.u32 4294901760, %v308_v55  ;;  %v319_v1 = vand.u32 4294901760, %v318_v57  ;;  %v2566_v7 = vsub.f32 %v984_v60, %v2551_v0  ;;  %p2279_p8 = pnand %p2278_p7, %p2272_p4 }
  0x36   : > { %2029 = vmatprep.mubr.f32.mxu0 %v289_v52  ;;  %2071 = vmatpush3.msra.mxu1 %v2423_v2  ;;  %v327_v62 = vand.u32 4294901760, %v2538_v58  ;;  %v337_v63 = vand.u32 4294901760, %v2541_v59  ;;  %v2678_v48 = vsub.f32 %v998_v34, %v2656_v41 }
  0x37   : > { %2045 = vmatprep.mubr.f32.mxu1 %v2463_v20  ;;  %2056 = vmatprep.subr.mxu0 %v2444_v10  ;;  %v2572_v9 = vand.u32 4294901760, %v2566_v7 }
  0x38   : > { %2030 = vmatmul.mubr.f32.gmra.mxu0 %v299_v56  ;;  %2046 = vmatmul.mubr.f32.gmra.mxu1 %v2465_v21  ;;  %v328_v4 = vsub.f32 %v2538_v58, %v327_v62  ;;  %v338_v5 = vsub.f32 %v2541_v59, %v337_v63  ;;  %v1118_v56 = vand.u32 4294901760, %v2678_v48 }
  0x39   : > { %2032 = vmatprep.mubr.f32.mxu0 %v309_v61  ;;  %2048 = vmatprep.mubr.f32.mxu1 %v2490_v32  ;;  %v1188_v11 = vsub.f32 %v2566_v7, %v2572_v9 }
  0x3a   : > { %2057 = vmatpush3.msra.mxu0 %v2444_v10  ;;  %2072 = vmatprep.subr.mxu1 %v2425_v3  ;;  %v329_v6 = vand.u32 4294901760, %v328_v4  ;;  %v339_v8 = vand.u32 4294901760, %v338_v5  ;;  %v983_v10 = vld [vmem:[%s2524_s29] sm:$0xff] }
  0x3b   : > { %2073 = vmatpush3.msra.mxu1 %v2425_v3  ;;  %2086 = vmatprep.subr.mxu0 %v2458_v18  ;;  %v2584_v12 = vand.u32 4294901760, %v983_v10  ;;  %v1189_v16 = vand.u32 4294901760, %v1188_v11 }
  0x3c   : > { %2033 = vmatmul.mubr.f32.gmra.mxu0 %v319_v1  ;;  %2049 = vmatmul.mubr.f32.gmra.mxu1 %v2492_v33 }
  0x3d   : > { %2035 = vmatprep.mubr.f32.mxu0 %v329_v6  ;;  %2051 = vmatprep.mubr.f32.mxu1 %v2526_v53  ;;  %v2598_v17 = vsub.f32 %v983_v10, %v2584_v12 }
  0x3e   : > { %2102 = vmatprep.subr.mxu1 %v2423_v2 }
  0x40   : > { %2036 = vmatmul.mubr.f32.gmra.mxu0 %v339_v8  ;;  %2052 = vmatmul.mubr.f32.gmra.mxu1 %v2528_v54 }
  0x41   : > { %2058 = vmatprep.mubr.f32.mxu0 %v2469_v22  ;;  %2074 = vmatprep.mubr.f32.mxu1 %v267_v30  ;;  %v2612_v22 = vand.u32 4294901760, %v2598_v17 }
  0x43   : > { %v1195_v26 = vsub.f32 %v2598_v17, %v2612_v22 }
  0x44   : > { %2059 = vmatmul.mubr.f32.vlgmr.msra.gmra.mxu0 %v2472_v23  ;;  %2075 = vmatmul.mubr.f32.vlgmr.msra.gmra.mxu1 %v277_v31  ;;  %v1875_v23 = vld [vmem:[%s2580_s4 + $0xc8] sm:$0xff]  ;;  %v995_v31 = vsel %vm173_vm0, %v1876_v25, 0 }
  0x45   : > { %2087 = vmatpush3.msra.mxu0 %v2458_v18  ;;  %2061 = vmatprep.mubr.f32.mxu0 %v2483_v28  ;;  %v1874_v18 = vld [vmem:[%s2580_s4 + $0xa8] sm:$0xff]  ;;  %v1196_v36 = vand.u32 4294901760, %v1195_v26 }
  0x46   : > { %2103 = vmatpush3.msra.mxu1 %v2423_v2  ;;  %2077 = vmatprep.mubr.f32.mxu1 %v287_v38  ;;  %v986_v2 = vsel %vm173_vm0, %v1873_v13, 0 }
  0x47   : > { %2088 = vmatprep.subr.mxu0 %v2461_v19  ;;  %2104 = vmatprep.subr.mxu1 %v2425_v3  ;;  %v2618_v24 = vand.u32 4294901760, %v986_v2 }
  0x48   : > { %2062 = vmatmul.mubr.f32.gmra.mxu0 %v2486_v29  ;;  %2078 = vmatmul.mubr.f32.gmra.mxu1 %v297_v39 }
  0x49   : > { %2064 = vmatprep.mubr.f32.mxu0 %v2506_v42  ;;  %2080 = vmatprep.mubr.f32.mxu1 %v307_v50  ;;  %v2631_v28 = vsub.f32 %v986_v2, %v2618_v24  ;;  %v1001_v42 = vsel %vm173_vm0, %v1878_v35, 0 }
  0x4a   : > { %2089 = vmatpush3.msra.mxu0 %v2461_v19  ;;  %2105 = vmatpush3.msra.mxu1 %v2425_v3  ;;  %v989_v3 = vsel %vm173_vm0, %v1874_v18, 0  ;;  %v992_v19 = vsel %vm173_vm0, %v1875_v23, 0 }
  0x4b   : > { %2118 = vmatprep.subr.mxu0 %v2551_v0  ;;  %2134 = vmatprep.subr.mxu1 %v1189_v16  ;;  %v2633_v29 = vand.u32 4294901760, %v989_v3  ;;  %v2637_v30 = vand.u32 4294901760, %v992_v19  ;;  %v1078_v38 = vand.u32 4294901760, %v2631_v28 }
  0x4c   : > { %2065 = vmatmul.mubr.f32.gmra.mxu0 %v2509_v43  ;;  %2081 = vmatmul.mubr.f32.gmra.mxu1 %v317_v51  ;;  %v1880_v43 = vld [vmem:[%s2580_s4 + $0x120] sm:$0xff] }
  0x4d   : > { %2067 = vmatprep.mubr.f32.mxu0 %v2538_v58  ;;  %2083 = vmatprep.mubr.f32.mxu1 %v327_v62  ;;  %v2647_v39 = vsub.f32 %v989_v3, %v2633_v29  ;;  %v2654_v40 = vsub.f32 %v992_v19, %v2637_v30  ;;  %v1079_v44 = vsub.f32 %v2631_v28, %v1078_v38  ;;  %v1007_v49 = vsel %vm173_vm0, %v1880_v43, 0 }
  0x4e   : > { %v2695_v52 = vand.u32 4294901760, %v1007_v49  ;;  %v1119_v62 = vsub.f32 %v2678_v48, %v1118_v56 }
  0x4f   : > { %v1088_v45 = vand.u32 4294901760, %v2647_v39  ;;  %v1098_v47 = vand.u32 4294901760, %v2654_v40  ;;  %v1080_v55 = vand.u32 4294901760, %v1079_v44 }
  0x50   : > { %2068 = vmatmul.mubr.f32.gmra.mxu0 %v2541_v59  ;;  %2084 = vmatmul.mubr.f32.gmra.mxu1 %v337_v63  ;;  %v1120_v5 = vand.u32 4294901760, %v1119_v62 }
  0x51   : > { %2090 = vmatprep.mubr.f32.mxu0 %v2450_v14  ;;  %2106 = vmatprep.mubr.f32.mxu1 %v2450_v14  ;;  %v2649_v14 = vand.u32 4294901760, %v995_v31 }
  0x53   : > { %v2670_v46 = vsub.f32 %v995_v31, %v2649_v14 }
  0x54   : > { %2091 = vmatmul.mubr.f32.vlgmr.msra.gmra.mxu0 %v2452_v15  ;;  %2107 = vmatmul.mubr.f32.vlgmr.msra.gmra.mxu1 %v2452_v15  ;;  %v1004_v15 = vsel %vm173_vm0, %v1879_v37, 0 }
  0x55   : > { %2119 = vmatpush3.msra.mxu0 %v2551_v0  ;;  %2093 = vmatprep.mubr.f32.mxu0 %v2463_v20  ;;  %v1108_v50 = vand.u32 4294901760, %v2670_v46 }
  0x56   : > { %2135 = vmatpush3.msra.mxu1 %v1189_v16  ;;  %2109 = vmatprep.mubr.f32.mxu1 %v2463_v20  ;;  %v2672_v20 = vand.u32 4294901760, %v1001_v42 }
  0x57   : > { %2120 = vmatprep.subr.mxu0 %v2584_v12  ;;  %2136 = vmatprep.subr.mxu1 %v1196_v36  ;;  %v1109_v59 = vsub.f32 %v2670_v46, %v1108_v50 }
  0x58   : > { %2094 = vmatmul.mubr.f32.gmra.mxu0 %v2465_v21  ;;  %2110 = vmatmul.mubr.f32.gmra.mxu1 %v2465_v21  ;;  %v2680_v21 = vand.u32 4294901760, %v1004_v15  ;;  %v2693_v51 = vsub.f32 %v1001_v42, %v2672_v20 }
  0x59   : > { %2096 = vmatprep.mubr.f32.mxu0 %v2490_v32  ;;  %2112 = vmatprep.mubr.f32.mxu1 %v2490_v32  ;;  %v1089_v32 = vsub.f32 %v2647_v39, %v1088_v45  ;;  %v1110_v1 = vand.u32 4294901760, %v1109_v59 }
  0x5a   : > { %2121 = vmatpush3.msra.mxu0 %v2584_v12  ;;  %2137 = vmatpush3.msra.mxu1 %v1196_v36  ;;  %v1137_v57 = vsub.f32 %v1004_v15, %v2680_v21  ;;  %v1128_v60 = vand.u32 4294901760, %v2693_v51 }
  0x5b   : > { %2150 = vmatprep.subr.mxu0 %v2566_v7  ;;  %2166 = vmatprep.subr.mxu1 %v2551_v0  ;;  %v1090_v58 = vand.u32 4294901760, %v1089_v32 }
  0x5c   : > { %2097 = vmatmul.mubr.f32.gmra.mxu0 %v2492_v33  ;;  %2113 = vmatmul.mubr.f32.gmra.mxu1 %v2492_v33  ;;  %v1099_v33 = vsub.f32 %v2654_v40, %v1098_v47  ;;  %v1138_v63 = vand.u32 4294901760, %v1137_v57 }
  0x5d   : > { %2099 = vmatprep.mubr.f32.mxu0 %v2526_v53  ;;  %2115 = vmatprep.mubr.f32.mxu1 %v2526_v53  ;;  %v1147_v53 = vsub.f32 %v1007_v49, %v2695_v52 }
  0x5e   : > { %v1100_v61 = vand.u32 4294901760, %v1099_v33  ;;  %v1139_v6 = vsub.f32 %v1137_v57, %v1138_v63 }
  0x5f   : > { %v1148_v4 = vand.u32 4294901760, %v1147_v53 }
  0x60   : > { %2100 = vmatmul.mubr.f32.gmra.mxu0 %v2528_v54  ;;  %2116 = vmatmul.mubr.f32.gmra.mxu1 %v2528_v54  ;;  %v1129_v54 = vsub.f32 %v2693_v51, %v1128_v60 }
  0x61   : > { %2122 = vmatprep.mubr.f32.mxu0 %v1080_v55  ;;  %2138 = vmatprep.mubr.f32.mxu1 %v2618_v24  ;;  %v1149_v10 = vsub.f32 %v1147_v53, %v1148_v4 }
  0x62   : > { %v1130_v8 = vand.u32 4294901760, %v1129_v54 }
  0x63   : > { %v1150_v11 = vand.u32 4294901760, %v1149_v10 }
  0x64   : > { %2123 = vmatmul.mubr.f32.vlgmr.msra.gmra.mxu0 %v1090_v58  ;;  %2139 = vmatmul.mubr.f32.vlgmr.msra.gmra.mxu1 %v2633_v29 }
  0x65   : > { %2151 = vmatpush3.msra.mxu0 %v2566_v7  ;;  %2125 = vmatprep.mubr.f32.mxu0 %v1100_v61  ;;  %v1140_v7 = vand.u32 4294901760, %v1139_v6 }
  0x66   : > { %2167 = vmatpush3.msra.mxu1 %v2551_v0  ;;  %2141 = vmatprep.mubr.f32.mxu1 %v2637_v30 }
  0x67   : > { %2152 = vmatprep.subr.mxu0 %v2598_v17  ;;  %2168 = vmatprep.subr.mxu1 %v2584_v12 }
  0x68   : > { %2126 = vmatmul.mubr.f32.gmra.mxu0 %v1110_v1  ;;  %2142 = vmatmul.mubr.f32.gmra.mxu1 %v2649_v14 }
  0x69   : > { %2128 = vmatprep.mubr.f32.mxu0 %v1120_v5  ;;  %2144 = vmatprep.mubr.f32.mxu1 %v2656_v41 }
  0x6a   : > { %2153 = vmatpush3.msra.mxu0 %v2598_v17  ;;  %2169 = vmatpush3.msra.mxu1 %v2584_v12 }
  0x6b   : > { %2182 = vmatprep.subr.mxu0 %v2572_v9  ;;  %2198 = vmatprep.subr.mxu1 %v2551_v0 }
  0x6c   : > { %2129 = vmatmul.mubr.f32.gmra.mxu0 %v1130_v8  ;;  %2145 = vmatmul.mubr.f32.gmra.mxu1 %v2672_v20 }
  0x6d   : > { %2131 = vmatprep.mubr.f32.mxu0 %v1140_v7  ;;  %2147 = vmatprep.mubr.f32.mxu1 %v2680_v21 }
  0x70   : > { %2132 = vmatmul.mubr.f32.gmra.mxu0 %v1150_v11  ;;  %2148 = vmatmul.mubr.f32.gmra.mxu1 %v2695_v52 }
  0x71   : > { %2154 = vmatprep.mubr.f32.mxu0 %v2631_v28  ;;  %2170 = vmatprep.mubr.f32.mxu1 %v1078_v38 }
  0x74   : > { %2155 = vmatmul.mubr.f32.vlgmr.msra.gmra.mxu0 %v2647_v39  ;;  %2171 = vmatmul.mubr.f32.vlgmr.msra.gmra.mxu1 %v1088_v45 }
  0x75   : > { %2183 = vmatpush3.msra.mxu0 %v2572_v9  ;;  %2157 = vmatprep.mubr.f32.mxu0 %v2654_v40 }
  0x76   : > { %2199 = vmatpush3.msra.mxu1 %v2551_v0  ;;  %2173 = vmatprep.mubr.f32.mxu1 %v1098_v47 }
  0x77   : > { %2184 = vmatprep.subr.mxu0 %v2612_v22  ;;  %2200 = vmatprep.subr.mxu1 %v2584_v12 }
  0x78   : > { %2158 = vmatmul.mubr.f32.gmra.mxu0 %v2670_v46  ;;  %2174 = vmatmul.mubr.f32.gmra.mxu1 %v1108_v50 }
  0x79   : > { %2160 = vmatprep.mubr.f32.mxu0 %v2678_v48  ;;  %2176 = vmatprep.mubr.f32.mxu1 %v1118_v56 }
  0x7a   : > { %2185 = vmatpush3.msra.mxu0 %v2612_v22  ;;  %2201 = vmatpush3.msra.mxu1 %v2584_v12 }
  0x7c   : > { %2161 = vmatmul.mubr.f32.gmra.mxu0 %v2693_v51  ;;  %2177 = vmatmul.mubr.f32.gmra.mxu1 %v1128_v60 }
  0x7d   : > { %2163 = vmatprep.mubr.f32.mxu0 %v1137_v57  ;;  %2179 = vmatprep.mubr.f32.mxu1 %v1138_v63 }
  0x80   : > { %2164 = vmatmul.mubr.f32.gmra.mxu0 %v1147_v53  ;;  %2180 = vmatmul.mubr.f32.gmra.mxu1 %v1148_v4 }
  0x81   : > { %2186 = vmatprep.mubr.f32.mxu0 %v2618_v24  ;;  %2202 = vmatprep.mubr.f32.mxu1 %v2618_v24 }
  0x84   : > { %2187 = vmatmul.mubr.f32.vlgmr.msra.gmra.mxu0 %v2633_v29  ;;  %2203 = vmatmul.mubr.f32.vlgmr.msra.gmra.mxu1 %v2633_v29 }
  0x85   : > { %2189 = vmatprep.mubr.f32.mxu0 %v2637_v30  ;;  %2205 = vmatprep.mubr.f32.mxu1 %v2637_v30 }
  0x88   : > { %2190 = vmatmul.mubr.f32.gmra.mxu0 %v2649_v14  ;;  %2206 = vmatmul.mubr.f32.gmra.mxu1 %v2649_v14 }
  0x89   : > { %2192 = vmatprep.mubr.f32.mxu0 %v2656_v41  ;;  %2208 = vmatprep.mubr.f32.mxu1 %v2656_v41 }
  0x8c   : > { %2193 = vmatmul.mubr.f32.gmra.mxu0 %v2672_v20  ;;  %2209 = vmatmul.mubr.f32.gmra.mxu1 %v2672_v20 }
  0x8d   : > { %2195 = vmatprep.mubr.f32.mxu0 %v2680_v21  ;;  %2211 = vmatprep.mubr.f32.mxu1 %v2680_v21 }
  0x90   : > { %2196 = vmatmul.mubr.f32.gmra.mxu0 %v2695_v52  ;;  %2212 = vmatmul.mubr.f32.gmra.mxu1 %v2695_v52 }
  0xf4   : > { %v2028_v0 = vpop.f32.mrf.mxu0  ;;  %v2044_v9 = vpop.f32.mrf.mxu1 }
  0xf5   : > { %v429_v14 = vadd.f32 %v2044_v9, %v2028_v0 }
  0xf6   : > { %v271_v12 = vpop.f32.mrf.mxu0  ;;  %v422_v13 = vpop.f32.mrf.mxu1 }
  0xf7   : > { %v423_v42 = vadd.f32 %v422_v13, %v271_v12 }
  0xf8   : > { %v2031_v16 = vpop.f32.mrf.mxu0  ;;  %v2047_v17 = vpop.f32.mrf.mxu1 }
  0xf9   : > { %v441_v45 = vadd.f32 %v2047_v17, %v2031_v16 }
  0xfa   : > { %v291_v2 = vpop.f32.mrf.mxu0  ;;  %v434_v18 = vpop.f32.mrf.mxu1 }
  0xfb   : > { %v435_v48 = vadd.f32 %v434_v18, %v291_v2 }
  0xfc   : > { %v2034_v22 = vpop.f32.mrf.mxu0  ;;  %v2050_v23 = vpop.f32.mrf.mxu1 }
  0xfd   : > { %v453_v51 = vadd.f32 %v2050_v23, %v2034_v22 }
  0xfe   : > { %v311_v24 = vpop.f32.mrf.mxu0  ;;  %v446_v3 = vpop.f32.mrf.mxu1 }
  0xff   : > { %v447_v56 = vadd.f32 %v446_v3, %v311_v24 }
 0x100   : > { %v2037_v19 = vpop.f32.mrf.mxu0  ;;  %v2053_v25 = vpop.f32.mrf.mxu1 }
 0x101   : > { %v465_v62 = vadd.f32 %v2053_v25, %v2037_v19 }
 0x102   : > { %v331_v26 = vpop.f32.mrf.mxu0  ;;  %v458_v27 = vpop.f32.mrf.mxu1 }
 0x103   : > { %v459_v8 = vadd.f32 %v458_v27, %v331_v26 }
 0x104   : > { %v2060_v28 = vpop.f32.mrf.mxu0  ;;  %v2076_v29 = vpop.f32.mrf.mxu1 }
 0x105   : > { %v548_v15 = vadd.f32 %v2060_v28, %v429_v14 }
 0x106   : > { %v540_v30 = vpop.f32.mrf.mxu0  ;;  %v664_v31 = vpop.f32.mrf.mxu1 }
 0x107   : > { %v541_v46 = vadd.f32 %v540_v30, %v423_v42  ;;  %v673_v21 = vadd.f32 %v2076_v29, %v548_v15 }
 0x108   : > { %v2063_v34 = vpop.f32.mrf.mxu0  ;;  %v2079_v35 = vpop.f32.mrf.mxu1 }
 0x109   : > { %v562_v49 = vadd.f32 %v2063_v34, %v441_v45  ;;  %v665_v52 = vadd.f32 %v664_v31, %v541_v46 }
 0x10a   : > { %v554_v36 = vpop.f32.mrf.mxu0  ;;  %v680_v37 = vpop.f32.mrf.mxu1 }
 0x10b   : > { %v555_v55 = vadd.f32 %v554_v36, %v435_v48  ;;  %v689_v59 = vadd.f32 %v2079_v35, %v562_v49 }
 0x10c   : > { %v2066_v38 = vpop.f32.mrf.mxu0  ;;  %v2082_v39 = vpop.f32.mrf.mxu1 }
 0x10d   : > { %v576_v60 = vadd.f32 %v2066_v38, %v453_v51  ;;  %v681_v54 = vadd.f32 %v680_v37, %v555_v55 }
 0x10e   : > { %v568_v40 = vpop.f32.mrf.mxu0  ;;  %v696_v41 = vpop.f32.mrf.mxu1 }
 0x10f   : > { %v569_v4 = vadd.f32 %v568_v40, %v447_v56  ;;  %v705_v11 = vadd.f32 %v2082_v39, %v576_v60 }
 0x110   : > { %v2069_v43 = vpop.f32.mrf.mxu0  ;;  %v2085_v44 = vpop.f32.mrf.mxu1 }
 0x111   : > { %v590_v0 = vadd.f32 %v2069_v43, %v465_v62  ;;  %v697_v17 = vadd.f32 %v696_v41, %v569_v4 }
 0x112   : > { %v582_v20 = vpop.f32.mrf.mxu0  ;;  %v712_v47 = vpop.f32.mrf.mxu1 }
 0x113   : > { %v583_v2 = vadd.f32 %v582_v20, %v459_v8  ;;  %v721_v3 = vadd.f32 %v2085_v44, %v590_v0 }
 0x114   : > { %v2092_v32 = vpop.f32.mrf.mxu0  ;;  %v2108_v50 = vpop.f32.mrf.mxu1 }
 0x115   : > { %v804_v33 = vadd.f32 %v2092_v32, %v673_v21  ;;  %v713_v28 = vadd.f32 %v712_v47, %v583_v2 }
 0x116   : > { %v797_v57 = vpop.f32.mrf.mxu0  ;;  %v912_v58 = vpop.f32.mrf.mxu1 }
 0x117   : > { %v798_v53 = vadd.f32 %v797_v57, %v665_v52  ;;  %v919_v61 = vadd.f32 %v2108_v50, %v804_v33 }
 0x118   : > { %v2095_v63 = vpop.f32.mrf.mxu0  ;;  %v2111_v1 = vpop.f32.mrf.mxu1 }
 0x119   : > { %959 = vst.msk [vmem:[%s2764_s7 + $0x8] sm:$0xff] %vm173_vm0, %v919_v61  ;;  %v816_v5 = vadd.f32 %v2095_v63, %v689_v59  ;;  %v913_v6 = vadd.f32 %v912_v58, %v798_v53 }
 0x11a   : > { %v809_v10 = vpop.f32.mrf.mxu0  ;;  %v924_v7 = vpop.f32.mrf.mxu1 }
 0x11b   : > { %958 = vst.msk [vmem:[%s2764_s7] sm:$0xff] %vm173_vm0, %v913_v6  ;;  %v810_v9 = vadd.f32 %v809_v10, %v681_v54  ;;  %v931_v12 = vadd.f32 %v2111_v1, %v816_v5 }
 0x11c   : > { %v2098_v13 = vpop.f32.mrf.mxu0  ;;  %v2114_v16 = vpop.f32.mrf.mxu1 }
 0x11d   : > { %961 = vst.msk [vmem:[%s2764_s7 + $0x18] sm:$0xff] %vm173_vm0, %v931_v12  ;;  %v828_v18 = vadd.f32 %v2098_v13, %v705_v11  ;;  %v925_v22 = vadd.f32 %v924_v7, %v810_v9 }
 0x11e   : > { %v821_v23 = vpop.f32.mrf.mxu0  ;;  %v936_v24 = vpop.f32.mrf.mxu1 }
 0x11f   : > { %960 = vst.msk [vmem:[%s2764_s7 + $0x10] sm:$0xff] %vm173_vm0, %v925_v22  ;;  %v822_v19 = vadd.f32 %v821_v23, %v697_v17  ;;  %v943_v25 = vadd.f32 %v2114_v16, %v828_v18 }
 0x120   : > { %v2101_v26 = vpop.f32.mrf.mxu0  ;;  %v2117_v27 = vpop.f32.mrf.mxu1 }
 0x121   : > { %963 = vst.msk [vmem:[%s2764_s7 + $0x28] sm:$0xff] %vm173_vm0, %v943_v25  ;;  %v840_v29 = vadd.f32 %v2101_v26, %v721_v3  ;;  %v937_v30 = vadd.f32 %v936_v24, %v822_v19 }
 0x122   : > { %v833_v31 = vpop.f32.mrf.mxu0  ;;  %v948_v34 = vpop.f32.mrf.mxu1 }
 0x123   : > { %962 = vst.msk [vmem:[%s2764_s7 + $0x20] sm:$0xff] %vm173_vm0, %v937_v30  ;;  %v834_v35 = vadd.f32 %v833_v31, %v713_v28  ;;  %v955_v36 = vadd.f32 %v2117_v27, %v840_v29 }
 0x124   : > { %v2124_v37 = vpop.f32.mrf.mxu0  ;;  %v2140_v38 = vpop.f32.mrf.mxu1 }
 0x125   : > { %965 = vst.msk [vmem:[%s2764_s7 + $0x38] sm:$0xff] %vm173_vm0, %v955_v36  ;;  %v949_v39 = vadd.f32 %v948_v34, %v834_v35  ;;  %v1240_v60 = vadd.f32 %v2140_v38, %v2124_v37 }
 0x126   : > { %v1082_v14 = vpop.f32.mrf.mxu0  ;;  %v1233_v40 = vpop.f32.mrf.mxu1 }
 0x127   : > { %964 = vst.msk [vmem:[%s2764_s7 + $0x30] sm:$0xff] %vm173_vm0, %v949_v39  ;;  %v1234_v62 = vadd.f32 %v1233_v40, %v1082_v14 }
 0x128   : > { %v2127_v41 = vpop.f32.mrf.mxu0  ;;  %v2143_v42 = vpop.f32.mrf.mxu1 }
 0x129   : > { %v1252_v4 = vadd.f32 %v2143_v42, %v2127_v41 }
 0x12a   : > { %v1102_v15 = vpop.f32.mrf.mxu0  ;;  %v1245_v43 = vpop.f32.mrf.mxu1 }
 0x12b   : > { %v1246_v10 = vadd.f32 %v1245_v43, %v1102_v15 }
 0x12c   : > { %v2130_v44 = vpop.f32.mrf.mxu0  ;;  %v2146_v45 = vpop.f32.mrf.mxu1 }
 0x12d   : > { %v1264_v12 = vadd.f32 %v2146_v45, %v2130_v44 }
 0x12e   : > { %v1122_v46 = vpop.f32.mrf.mxu0  ;;  %v1257_v20 = vpop.f32.mrf.mxu1 }
 0x12f   : > { %v1258_v2 = vadd.f32 %v1257_v20, %v1122_v46 }
 0x130   : > { %v2133_v47 = vpop.f32.mrf.mxu0  ;;  %v2149_v48 = vpop.f32.mrf.mxu1 }
 0x131   : > { %v1276_v25 = vadd.f32 %v2149_v48, %v2133_v47 }
 0x132   : > { %v1142_v21 = vpop.f32.mrf.mxu0  ;;  %v1269_v49 = vpop.f32.mrf.mxu1 }
 0x133   : > { %v1270_v34 = vadd.f32 %v1269_v49, %v1142_v21 }
 0x134   : > { %v2156_v32 = vpop.f32.mrf.mxu0  ;;  %v2172_v50 = vpop.f32.mrf.mxu1 }
 0x135   : > { %v1359_v63 = vadd.f32 %v2156_v32, %v1240_v60 }
 0x136   : > { %v1351_v51 = vpop.f32.mrf.mxu0  ;;  %v1475_v52 = vpop.f32.mrf.mxu1 }
 0x137   : > { %v1352_v5 = vadd.f32 %v1351_v51, %v1234_v62  ;;  %v1484_v7 = vadd.f32 %v2172_v50, %v1359_v63 }
 0x138   : > { %v2159_v55 = vpop.f32.mrf.mxu0  ;;  %v2175_v33 = vpop.f32.mrf.mxu1 }
 0x139   : > { %v1373_v11 = vadd.f32 %v2159_v55, %v1252_v4  ;;  %v1476_v13 = vadd.f32 %v1475_v52, %v1352_v5 }
 0x13a   : > { %v1365_v56 = vpop.f32.mrf.mxu0  ;;  %v1491_v57 = vpop.f32.mrf.mxu1 }
 0x13b   : > { %v1366_v16 = vadd.f32 %v1365_v56, %v1246_v10  ;;  %v1500_v23 = vadd.f32 %v2175_v33, %v1373_v11 }
 0x13c   : > { %v2162_v58 = vpop.f32.mrf.mxu0  ;;  %v2178_v59 = vpop.f32.mrf.mxu1 }
 0x13d   : > { %v1387_v24 = vadd.f32 %v2162_v58, %v1264_v12  ;;  %v1492_v28 = vadd.f32 %v1491_v57, %v1366_v16 }
 0x13e   : > { %v1379_v53 = vpop.f32.mrf.mxu0  ;;  %v1507_v61 = vpop.f32.mrf.mxu1 }
 0x13f   : > { %v1380_v29 = vadd.f32 %v1379_v53, %v1258_v2  ;;  %v1516_v37 = vadd.f32 %v2178_v59, %v1387_v24 }
 0x140   : > { %v2165_v1 = vpop.f32.mrf.mxu0  ;;  %v2181_v54 = vpop.f32.mrf.mxu1 }
 0x141   : > { %v1401_v38 = vadd.f32 %v2165_v1, %v1276_v25  ;;  %v1508_v42 = vadd.f32 %v1507_v61, %v1380_v29 }
 0x142   : > { %v1393_v6 = vpop.f32.mrf.mxu0  ;;  %v1523_v8 = vpop.f32.mrf.mxu1 }
 0x143   : > { %v1394_v15 = vadd.f32 %v1393_v6, %v1270_v34  ;;  %v1532_v20 = vadd.f32 %v2181_v54, %v1401_v38 }
 0x144   : > { %v2188_v0 = vpop.f32.mrf.mxu0  ;;  %v2204_v9 = vpop.f32.mrf.mxu1 }
 0x145   : > { %v1615_v17 = vadd.f32 %v2188_v0, %v1484_v7  ;;  %v1524_v32 = vadd.f32 %v1523_v8, %v1394_v15 }
 0x146   : > { %v1608_v18 = vpop.f32.mrf.mxu0  ;;  %v1723_v22 = vpop.f32.mrf.mxu1 }
 0x147   : > { %v1609_v3 = vadd.f32 %v1608_v18, %v1476_v13  ;;  %v1730_v19 = vadd.f32 %v2204_v9, %v1615_v17 }
 0x148   : > { %v2191_v26 = vpop.f32.mrf.mxu0  ;;  %v2207_v27 = vpop.f32.mrf.mxu1 }
 0x149   : > { %1883 = vst.msk [vmem:[%s2764_s7 + $0x48] sm:$0xff] %vm173_vm0, %v1730_v19  ;;  %v1627_v30 = vadd.f32 %v2191_v26, %v1500_v23  ;;  %v1724_v31 = vadd.f32 %v1723_v22, %v1609_v3 }
 0x14a   : > { %v1620_v35 = vpop.f32.mrf.mxu0  ;;  %v1735_v36 = vpop.f32.mrf.mxu1 }
 0x14b   : > { %1882 = vst.msk [vmem:[%s2764_s7 + $0x40] sm:$0xff] %vm173_vm0, %v1724_v31  ;;  %v1621_v39 = vadd.f32 %v1620_v35, %v1492_v28  ;;  %v1742_v14 = vadd.f32 %v2207_v27, %v1627_v30 }
 0x14c   : > { %v2194_v40 = vpop.f32.mrf.mxu0  ;;  %v2210_v41 = vpop.f32.mrf.mxu1 }
 0x14d   : > { %1885 = vst.msk [vmem:[%s2764_s7 + $0x58] sm:$0xff] %vm173_vm0, %v1742_v14  ;;  %v1639_v43 = vadd.f32 %v2194_v40, %v1516_v37  ;;  %v1736_v44 = vadd.f32 %v1735_v36, %v1621_v39 }
 0x14e   : > { %v1632_v45 = vpop.f32.mrf.mxu0  ;;  %v1747_v46 = vpop.f32.mrf.mxu1 }
 0x14f   : > { %1884 = vst.msk [vmem:[%s2764_s7 + $0x50] sm:$0xff] %vm173_vm0, %v1736_v44  ;;  %v1633_v47 = vadd.f32 %v1632_v45, %v1508_v42  ;;  %v1754_v48 = vadd.f32 %v2210_v41, %v1639_v43 }
 0x150   : > { %v2197_v21 = vpop.f32.mrf.mxu0  ;;  %v2213_v49 = vpop.f32.mrf.mxu1 }
 0x151   : > { %1887 = vst.msk [vmem:[%s2764_s7 + $0x68] sm:$0xff] %vm173_vm0, %v1754_v48  ;;  %v1651_v50 = vadd.f32 %v2197_v21, %v1532_v20  ;;  %v1748_v51 = vadd.f32 %v1747_v46, %v1633_v47 }
 0x152   : > { %v1644_v52 = vpop.f32.mrf.mxu0  ;;  %v1759_v55 = vpop.f32.mrf.mxu1 }
 0x153   : > { %1886 = vst.msk [vmem:[%s2764_s7 + $0x60] sm:$0xff] %vm173_vm0, %v1748_v51  ;;  %v1645_v33 = vadd.f32 %v1644_v52, %v1524_v32  ;;  %v1766_v56 = vadd.f32 %v2213_v49, %v1651_v50 }
 0x155   : > { %1889 = vst.msk [vmem:[%s2764_s7 + $0x78] sm:$0xff] %vm173_vm0, %v1766_v56  ;;  %v1760_v57 = vadd.f32 %v1759_v55, %v1645_v33 }
 0x157   : > { %1888 = vst.msk [vmem:[%s2764_s7 + $0x70] sm:$0xff] %vm173_vm0, %v1760_v57 }
 0x158   : > { %2282 = shalt.err (!%p2279_p8)
}
 0x159   : > { %s2283_s21 = scalar_lea.hbm %s2799_s12, 2048  ;;  %s2287_s29 = scalar_lea.hbm %s2852_s3, 4096 }
 0x15a   : > { %p2284_p9 = scmp.ne.s32.totalorder %s2799_s12, %s2283_s21  ;;  %p2288_p0 = scmp.lt.s32.totalorder %s2799_s12, %s2852_s3 }
 0x15b   : > { %p2289_p1 = scmp.lt.s32.totalorder %s2287_s29, %s2283_s21 }
 0x15c   : > { %p2285_p12 = pnand %p2284_p9, %p2398_p10 }
 0x15d   : > { %p2290_p2 = por %p2289_p1, %p2288_p0 }
 0x15e   : > { %p2286_p13 = pneg %p2285_p12 }
 0x160   : > { %p2291_p3 = pnand %p2290_p2, %p2286_p13 }
 0x162   : > { %2294 = shalt.err (!%p2291_p3)
}
 0x163   : > { %s2335_s4 = smov 128   ;;  %s2336_s5 = smov 8  }
 0x164   : > { %2215 = dma.vmem_to_hbm [thread:$0]  (%p2398_p10), %s2801_s9, 2048, %s2799_s12, %s2809_s20, %s2335_s4, %s2335_s4, %s2336_s5  }
 0x165 PF: > { %p2221_p4 = scmp.ge.s32.totalorder %s2331_s19, 2  ;;  %s1808_s6 = sand.u32 1, %s2319_s17  }
 0x166   : > { %s1809_s7 = scalar_lea.sflag [#allocation5], %s1808_s6 }
 0x167   : > { %p2218_p5 = pnand %p2221_p4, %p2402_p11 }
 0x169   : > { %p2219_p6 = pneg %p2218_p5 }
 0x16b   : > { %2314 = dma.done.wait (%p2219_p6), %s1809_s7, 2048  }
 0x16c   : > { %2316 = vsyncadd (%p2219_p6), %s1809_s7, 4294965248  ;;  %p19_p7 = scmp.ge.s32.totalorder %s2385_s22, 4   ;;  %s2855_s17 = smov %s2323_s18 }
 0x16d   : > { %s2856_s18 = smov %s2327_s0  ;;  %s2857_s0 = smov %s2396_s25 }
 0x16e   : > { %s2858_s19 = smov %s2385_s22  ;;  %21 = sbr.rel (!%p19_p7) target bundleno = 18 (0x12), region = 68 }
 0x173   :  { %1814 = vsyncpa [#allocation5], 1 }
 0x174   :  { %1816 = vsyncpa [#allocation5 + $0x1], 1 }

</bundles_post_ra>
